<compile_context>
chip_gen: v6e
topology: v6e:2x2x1
jax: 0.10.0
libtpu: 0.0.40
codegen_flags: <defaults>
</compile_context>

<pallas_src>
import functools
import math

import jax
import jax.numpy as jnp
from jax import lax
from jax.experimental import pallas as pl
from jax.experimental.pallas import tpu as pltpu


def _round_up(a: int, b: int) -> int:
    return ((a + b - 1) // b) * b


def _vmem_capacity_bytes() -> int:
    """Per-generation VMEM capacity; conservative (v7x) fallback if query fails."""
    try:
        return int(pltpu.get_tpu_info().vmem_capacity_bytes)
    except Exception:
        return 64 << 20


def _choose_h_chunk(h: int, upcast_x: bool) -> int:
    """Chunk the hidden axis only when the f32 upcast temp would otherwise be large."""
    if not upcast_x or h <= 1024:
        return h
    for th in (1024, 512, 256):
        if h % th == 0:
            return th
    return h


def _vmem_need_bytes(tm: int, h: int, th: int, e: int, k: int,
                     x_itemsize: int, w_itemsize: int, upcast_x: bool) -> int:
    need = 2 * tm * h * x_itemsize            # double-buffered x tile stream
    need += e * h * w_itemsize                # resident weight (single-buffered)
    need += 2 * 2 * k * tm * 4                # double-buffered value (f32) + index (i32) out tiles
    if upcast_x:
        need += tm * th * 4                   # f32 upcast temp for one H chunk (review item 1)
    need += 6 * max(e, 8) * tm * 4            # [E, TM] work arrays: logits, work, iota, masks, exp
    need += 2 << 20                           # compiler-internal / matmul scratch headroom
    return need


def _choose_token_tile(t: int, h: int, th: int, e: int, k: int,
                       x_itemsize: int, w_itemsize: int, upcast_x: bool,
                       target: int, budget_bytes: int) -> int:
    # Keep tm a multiple of 128 so tokens stay lane-dense in-kernel and in the outputs.
    tm = min(_round_up(target, 128), _round_up(max(t, 1), 128))
    while tm > 128 and _vmem_need_bytes(tm, h, th, e, k, x_itemsize, w_itemsize, upcast_x) > budget_bytes:
        tm -= 128
    return tm


def _router_kernel(x_ref, w_ref, vals_ref, idx_ref, *, top_k, h_chunk, upcast_x):
    # x_ref: [TM, H] (native activation dtype), w_ref: [E, H] (f32 or bf16).
    # Tokens live on the lane axis: all work arrays are [E, TM] / [K, TM].
    e, h = w_ref.shape

    def chunk_logits(start):
        xc = x_ref[:, pl.ds(start, h_chunk)]
        wc = w_ref[:, pl.ds(start, h_chunk)]
        if upcast_x:
            xc = xc.astype(jnp.float32)       # exact upcast of one chunk only
        # logits[e, t] = sum_h wc[e, h] * xc[t, h] -- contract H of both operands, no transpose.
        return lax.dot_general(
            wc, xc,
            dimension_numbers=(((1,), (1,)), ((), ())),
            preferred_element_type=jnp.float32,
        )  # [E, TM] f32

    logits = chunk_logits(0)
    for c in range(1, h // h_chunk):
        logits = logits + chunk_logits(c * h_chunk)

    # Numerically-stable softmax pieces over the expert (sublane) axis.
    m = jnp.max(logits, axis=0, keepdims=True)                       # [1, TM]
    s = jnp.sum(jnp.exp(logits - m), axis=0, keepdims=True)          # [1, TM]
    # Exact reciprocal keeps f32 parity with F.softmax; approx=True (EUP vrcp) is an
    # option if a ~1e-4-relative numeric contract is acceptable.
    inv_s = pl.reciprocal(s, approx=False)

    # Iterative top-k on the logits (softmax is monotone); normalize only the K picks.
    # Ties resolve to the lowest expert index (matches lax.top_k / typical torch.topk).
    row = lax.broadcasted_iota(jnp.int32, logits.shape, 0)
    work = logits
    for kk in range(top_k):
        v = jnp.max(work, axis=0, keepdims=True)                     # [1, TM]
        hit = work == v
        i = jnp.min(jnp.where(hit, row, e), axis=0, keepdims=True)   # lowest idx on ties
        # Write each pick straight into the output tile (no sublane concatenate).
        vals_ref[pl.ds(kk, 1), :] = jnp.exp(v - m) * inv_s           # softmax value of pick
        idx_ref[pl.ds(kk, 1), :] = i.astype(jnp.int32)
        if kk + 1 < top_k:
            work = jnp.where(row == i, -jnp.inf, work)               # drop selected expert


def router_forward(x, weight, top_k, *, block_tokens=None, exact_f32_gating=True):
    """x: [..., H] (any float dtype), weight: [E, H] float32
    -> (routing_weights [..., K] float32, routing_indices [..., K] int32)."""
    h = x.shape[-1]
    t = math.prod(x.shape[:-1])
    e = weight.shape[0]
    assert 1 <= top_k <= e, f"top_k={top_k} must be in [1, num_experts={e}]"

    x2 = x.reshape(t, h)
    if exact_f32_gating:
        w = weight.astype(jnp.float32)
        upcast_x = x2.dtype != jnp.float32
    else:
        # bf16 MXU path: relaxes the exact-f32 gating contract (~1e-3 relative).
        w = weight.astype(x2.dtype)
        upcast_x = False

    h_chunk = _choose_h_chunk(h, upcast_x)

    # Per-generation VMEM budget (v7x: 64 MiB physical; v5e/v6e: 128 MiB).
    cap = _vmem_capacity_bytes()
    if block_tokens is None:
        block_tokens = 2048 if cap >= (96 << 20) else 1024
    budget = cap // 2

    tm = _choose_token_tile(t, h, h_chunk, e, top_k, x2.dtype.itemsize, w.dtype.itemsize,
                            upcast_x, target=block_tokens, budget_bytes=budget)
    t_pad = _round_up(t, tm)
    if t_pad != t:
        # Pad the ragged tail; padded rows produce harmless (finite) garbage, sliced off below.
        x2 = jnp.pad(x2, ((0, t_pad - t), (0, 0)))

    need = _vmem_need_bytes(tm, h, h_chunk, e, top_k, x2.dtype.itemsize, w.dtype.itemsize, upcast_x)
    vmem_limit = int(min(cap * 7 // 8, max(32 << 20, 2 * need)))

    kernel = functools.partial(_router_kernel, top_k=top_k, h_chunk=h_chunk, upcast_x=upcast_x)

    def build(single_buffer_weight: bool):
        w_spec_kwargs = {"pipeline_mode": pl.Buffered(1)} if single_buffer_weight else {}
        return pl.pallas_call(
            kernel,
            out_shape=(
                jax.ShapeDtypeStruct((top_k, t_pad), jnp.float32),
                jax.ShapeDtypeStruct((top_k, t_pad), jnp.int32),
            ),
            grid=(t_pad // tm,),
            in_specs=[
                pl.BlockSpec((tm, h), lambda i: (i, 0)),                   # x tile: pipelined over tokens
                pl.BlockSpec((e, h), lambda i: (0, 0), **w_spec_kwargs),   # weight: constant block, DMA'd once
            ],
            out_specs=(
                pl.BlockSpec((top_k, tm), lambda i: (0, i)),
                pl.BlockSpec((top_k, tm), lambda i: (0, i)),
            ),
            compiler_params=pltpu.CompilerParams(
                dimension_semantics=("parallel",),   # tokens independent -> 2-TC sharding on v7x
                vmem_limit_bytes=vmem_limit,
            ),
        )

    try:
        vals_t, idx_t = build(True)(x2, w)
    except Exception:
        # Fallback if this Pallas build rejects single-buffering (Buffered(1)).
        vals_t, idx_t = build(False)(x2, w)

    # Outputs are produced lane-dense as [K, T]; transpose back to the module's [..., K].
    # TODO(synk): let the MoE dispatch consumer accept [K, T] directly to skip this
    #             extra XLA transpose (it has its own HBM round trip).
    out_shape = x.shape[:-1] + (top_k,)
    routing_weights = vals_t[:, :t].T.reshape(out_shape)
    routing_indices = idx_t[:, :t].T.reshape(out_shape)
    return routing_weights, routing_indices


if __name__ == "__main__":
    # Small, deterministic config: hidden=32, num_experts=8, top_k=2, batch=2, seq=8.
    batch, seq, hidden = 2, 8, 32
    num_experts, top_k = 8, 2

    key = jax.random.PRNGKey(0)
    k_w, k_x = jax.random.split(key)
    # Matches nn.Parameter(torch.randn(num_experts, hidden, dtype=float32)).
    weight = jax.random.normal(k_w, (num_experts, hidden), dtype=jnp.float32)
    # Activations in bf16 (gating casts to f32, as in the PyTorch module).
    x = jax.random.normal(k_x, (batch, seq, hidden), dtype=jnp.float32).astype(jnp.bfloat16)

    routing_weights, routing_indices = router_forward(x, weight, top_k)
    jax.block_until_ready((routing_weights, routing_indices))

    # Pure-JAX reference check.
    logits_ref = x.astype(jnp.float32) @ weight.T
    probs_ref = jax.nn.softmax(logits_ref, axis=-1)
    vals_ref, idx_ref = lax.top_k(probs_ref, top_k)

    assert routing_weights.shape == (batch, seq, top_k)
    assert routing_indices.shape == (batch, seq, top_k)
    assert routing_weights.dtype == jnp.float32
    assert routing_indices.dtype == jnp.int32
    assert jnp.allclose(routing_weights, vals_ref, atol=1e-5, rtol=1e-5)
    assert jnp.array_equal(routing_indices, idx_ref.astype(jnp.int32))

    print("KERNEL_OK")
</pallas_src>

<mosaic_0001>
module attributes {stable_mosaic.version = 11 : i64} {
  func.func @_router_kernel(%arg0: i32, %arg1: memref<128x32xbf16, #tpu.memory_space<vmem>>, %arg2: memref<8x32xf32, #tpu.memory_space<vmem>>, %arg3: memref<2x128xf32, #tpu.memory_space<vmem>>, %arg4: memref<2x128xi32, #tpu.memory_space<vmem>>) attributes {dimension_semantics = [#tpu.dimension_semantics<parallel>], iteration_bounds = array<i64: 1>, scalar_prefetch = 0 : i64, scratch_operands = 0 : i64, tpu.core_type = #tpu.core_type<tc>, window_params = [{transform_indices = @transform_0, window_bounds = array<i64: 128, 32>}, {pipeline_mode = #tpu.pipeline_mode<synchronous>, transform_indices = @transform_1, window_bounds = array<i64: 8, 32>}, {transform_indices = @transform_2, window_bounds = array<i64: 2, 128>}, {transform_indices = @transform_3, window_bounds = array<i64: 2, 128>}]} {
    %c0 = arith.constant 0 : index
    %c0_0 = arith.constant 0 : index
    %0 = vector.load %arg1[%c0, %c0_0] : memref<128x32xbf16, #tpu.memory_space<vmem>>, vector<128x32xbf16>
    %c0_1 = arith.constant 0 : index
    %c0_2 = arith.constant 0 : index
    %1 = vector.load %arg2[%c0_1, %c0_2] : memref<8x32xf32, #tpu.memory_space<vmem>>, vector<8x32xf32>
    %2 = arith.extf %0 : vector<128x32xbf16> to vector<128x32xf32>
    %cst = arith.constant dense<0.000000e+00> : vector<8x128xf32>
    %3 = tpu.matmul %1, %2, %cst {dimension_numbers = #tpu.dot_dimension_numbers<[1], [1], [0], [0], [0, 0, 1, 0], [], []>} : vector<8x32xf32>, vector<128x32xf32>, vector<8x128xf32> -> vector<8x128xf32>
    %cst_3 = arith.constant dense<0xFF800000> : vector<128xf32>
    %4 = vector.multi_reduction <maximumf>, %3, %cst_3 [0] : vector<8x128xf32> to vector<128xf32>
    %5 = vector.shape_cast %4 : vector<128xf32> to vector<1x128xf32>
    %6 = vector.broadcast %5 : vector<1x128xf32> to vector<8x128xf32>
    %7 = arith.subf %3, %6 : vector<8x128xf32>
    %8 = math.exp %7 : vector<8x128xf32>
    %cst_4 = arith.constant dense<0.000000e+00> : vector<128xf32>
    %9 = vector.multi_reduction <add>, %8, %cst_4 [0] : vector<8x128xf32> to vector<128xf32>
    %10 = vector.shape_cast %9 : vector<128xf32> to vector<1x128xf32>
    %11 = tpu.reciprocal %10 : vector<1x128xf32> -> vector<1x128xf32>
    %12 = tpu.iota {dimensions = array<i32: 0>} : vector<8x128xi32>
    %cst_5 = arith.constant dense<0xFF800000> : vector<128xf32>
    %13 = vector.multi_reduction <maximumf>, %3, %cst_5 [0] : vector<8x128xf32> to vector<128xf32>
    %14 = vector.shape_cast %13 : vector<128xf32> to vector<1x128xf32>
    %15 = vector.broadcast %14 : vector<1x128xf32> to vector<8x128xf32>
    %16 = arith.cmpf oeq, %3, %15 : vector<8x128xf32>
    %c8_i32 = arith.constant 8 : i32
    %17 = vector.broadcast %c8_i32 : i32 to vector<8x128xi32>
    %18 = arith.select %16, %12, %17 : vector<8x128xi1>, vector<8x128xi32>
    %cst_6 = arith.constant dense<2147483647> : vector<128xi32>
    %19 = vector.multi_reduction <minsi>, %18, %cst_6 [0] : vector<8x128xi32> to vector<128xi32>
    %20 = vector.shape_cast %19 : vector<128xi32> to vector<1x128xi32>
    %21 = arith.subf %14, %5 : vector<1x128xf32>
    %22 = math.exp %21 : vector<1x128xf32>
    %23 = arith.mulf %22, %11 : vector<1x128xf32>
    %c0_7 = arith.constant 0 : index
    %c0_8 = arith.constant 0 : index
    %24 = vector.load %arg3[%c0_7, %c0_8] : memref<2x128xf32, #tpu.memory_space<vmem>>, vector<1x128xf32>
    tpu.vector_store %arg3[%c0_7, %c0_8], %23 {strides = array<i32>} : memref<2x128xf32, #tpu.memory_space<vmem>>, vector<1x128xf32>,
    %c0_9 = arith.constant 0 : index
    %c0_10 = arith.constant 0 : index
    %25 = vector.load %arg4[%c0_9, %c0_10] : memref<2x128xi32, #tpu.memory_space<vmem>>, vector<1x128xi32>
    tpu.vector_store %arg4[%c0_9, %c0_10], %20 {strides = array<i32>} : memref<2x128xi32, #tpu.memory_space<vmem>>, vector<1x128xi32>,
    %26 = vector.broadcast %20 : vector<1x128xi32> to vector<8x128xi32>
    %27 = arith.cmpi eq, %12, %26 : vector<8x128xi32>
    %cst_11 = arith.constant 0xFF800000 : f32
    %28 = vector.broadcast %cst_11 : f32 to vector<8x128xf32>
    %29 = arith.select %27, %28, %3 : vector<8x128xi1>, vector<8x128xf32>
    %cst_12 = arith.constant dense<0xFF800000> : vector<128xf32>
    %30 = vector.multi_reduction <maximumf>, %29, %cst_12 [0] : vector<8x128xf32> to vector<128xf32>
    %31 = vector.shape_cast %30 : vector<128xf32> to vector<1x128xf32>
    %32 = vector.broadcast %31 : vector<1x128xf32> to vector<8x128xf32>
    %33 = arith.cmpf oeq, %29, %32 : vector<8x128xf32>
    %c8_i32_13 = arith.constant 8 : i32
    %34 = vector.broadcast %c8_i32_13 : i32 to vector<8x128xi32>
    %35 = arith.select %33, %12, %34 : vector<8x128xi1>, vector<8x128xi32>
    %cst_14 = arith.constant dense<2147483647> : vector<128xi32>
    %36 = vector.multi_reduction <minsi>, %35, %cst_14 [0] : vector<8x128xi32> to vector<128xi32>
    %37 = vector.shape_cast %36 : vector<128xi32> to vector<1x128xi32>
    %38 = arith.subf %31, %5 : vector<1x128xf32>
    %39 = math.exp %38 : vector<1x128xf32>
    %40 = arith.mulf %39, %11 : vector<1x128xf32>
    %c1 = arith.constant 1 : index
    %c0_15 = arith.constant 0 : index
    %41 = vector.load %arg3[%c1, %c0_15] : memref<2x128xf32, #tpu.memory_space<vmem>>, vector<1x128xf32>
    tpu.vector_store %arg3[%c1, %c0_15], %40 {strides = array<i32>} : memref<2x128xf32, #tpu.memory_space<vmem>>, vector<1x128xf32>,
    %c1_16 = arith.constant 1 : index
    %c0_17 = arith.constant 0 : index
    %42 = vector.load %arg4[%c1_16, %c0_17] : memref<2x128xi32, #tpu.memory_space<vmem>>, vector<1x128xi32>
    tpu.vector_store %arg4[%c1_16, %c0_17], %37 {strides = array<i32>} : memref<2x128xi32, #tpu.memory_space<vmem>>, vector<1x128xi32>,
    return
  }
  func.func @transform_0(%arg0: i32) -> (i32, i32) {
    %c0_i32 = arith.constant 0 : i32
    %c0_i32_0 = arith.constant 0 : i32
    return %arg0, %c0_i32 : i32, i32
  }
  func.func @transform_1(%arg0: i32) -> (i32, i32) {
    %c0_i32 = arith.constant 0 : i32
    %c0_i32_0 = arith.constant 0 : i32
    %c0_i32_1 = arith.constant 0 : i32
    return %c0_i32, %c0_i32_0 : i32, i32
  }
  func.func @transform_2(%arg0: i32) -> (i32, i32) {
    %c0_i32 = arith.constant 0 : i32
    %c0_i32_0 = arith.constant 0 : i32
    return %c0_i32, %arg0 : i32, i32
  }
  func.func @transform_3(%arg0: i32) -> (i32, i32) {
    %c0_i32 = arith.constant 0 : i32
    %c0_i32_0 = arith.constant 0 : i32
    return %c0_i32, %arg0 : i32, i32
  }
}

module attributes {stable_mosaic.version = 11 : i64} {
  func.func @_router_kernel(%arg0: i32, %arg1: memref<128x32xbf16, #tpu.memory_space<vmem>>, %arg2: memref<8x32xf32, #tpu.memory_space<vmem>>, %arg3: memref<2x128xf32, #tpu.memory_space<vmem>>, %arg4: memref<2x128xi32, #tpu.memory_space<vmem>>) attributes {dimension_semantics = [#tpu.dimension_semantics<parallel>], iteration_bounds = array<i64: 1>, scalar_prefetch = 0 : i64, scratch_operands = 0 : i64, tpu.core_type = #tpu.core_type<tc>, window_params = [{transform_indices = @transform_0, window_bounds = array<i64: 128, 32>}, {pipeline_mode = #tpu.pipeline_mode<synchronous>, transform_indices = @transform_1, window_bounds = array<i64: 8, 32>}, {transform_indices = @transform_2, window_bounds = array<i64: 2, 128>}, {transform_indices = @transform_3, window_bounds = array<i64: 2, 128>}]} {
    %c0 = arith.constant 0 : index
    %c0_0 = arith.constant 0 : index
    %0 = vector.load %arg1[%c0, %c0_0] : memref<128x32xbf16, #tpu.memory_space<vmem>>, vector<128x32xbf16>
    %c0_1 = arith.constant 0 : index
    %c0_2 = arith.constant 0 : index
    %1 = vector.load %arg2[%c0_1, %c0_2] : memref<8x32xf32, #tpu.memory_space<vmem>>, vector<8x32xf32>
    %2 = arith.extf %0 : vector<128x32xbf16> to vector<128x32xf32>
    %cst = arith.constant dense<0.000000e+00> : vector<8x128xf32>
    %3 = tpu.matmul %1, %2, %cst {dimension_numbers = #tpu.dot_dimension_numbers<[1], [1], [0], [0], [0, 0, 1, 0], [], []>} : vector<8x32xf32>, vector<128x32xf32>, vector<8x128xf32> -> vector<8x128xf32>
    %cst_3 = arith.constant dense<0xFF800000> : vector<128xf32>
    %4 = vector.multi_reduction <maximumf>, %3, %cst_3 [0] : vector<8x128xf32> to vector<128xf32>
    %5 = vector.shape_cast %4 : vector<128xf32> to vector<1x128xf32>
    %6 = vector.broadcast %5 : vector<1x128xf32> to vector<8x128xf32>
    %7 = arith.subf %3, %6 : vector<8x128xf32>
    %8 = math.exp %7 : vector<8x128xf32>
    %cst_4 = arith.constant dense<0.000000e+00> : vector<128xf32>
    %9 = vector.multi_reduction <add>, %8, %cst_4 [0] : vector<8x128xf32> to vector<128xf32>
    %10 = vector.shape_cast %9 : vector<128xf32> to vector<1x128xf32>
    %11 = tpu.reciprocal %10 : vector<1x128xf32> -> vector<1x128xf32>
    %12 = tpu.iota {dimensions = array<i32: 0>} : vector<8x128xi32>
    %cst_5 = arith.constant dense<0xFF800000> : vector<128xf32>
    %13 = vector.multi_reduction <maximumf>, %3, %cst_5 [0] : vector<8x128xf32> to vector<128xf32>
    %14 = vector.shape_cast %13 : vector<128xf32> to vector<1x128xf32>
    %15 = vector.broadcast %14 : vector<1x128xf32> to vector<8x128xf32>
    %16 = arith.cmpf oeq, %3, %15 : vector<8x128xf32>
    %c8_i32 = arith.constant 8 : i32
    %17 = vector.broadcast %c8_i32 : i32 to vector<8x128xi32>
    %18 = arith.select %16, %12, %17 : vector<8x128xi1>, vector<8x128xi32>
    %cst_6 = arith.constant dense<2147483647> : vector<128xi32>
    %19 = vector.multi_reduction <minsi>, %18, %cst_6 [0] : vector<8x128xi32> to vector<128xi32>
    %20 = vector.shape_cast %19 : vector<128xi32> to vector<1x128xi32>
    %21 = arith.subf %14, %5 : vector<1x128xf32>
    %22 = math.exp %21 : vector<1x128xf32>
    %23 = arith.mulf %22, %11 : vector<1x128xf32>
    %c0_7 = arith.constant 0 : index
    %c0_8 = arith.constant 0 : index
    %24 = vector.load %arg3[%c0_7, %c0_8] : memref<2x128xf32, #tpu.memory_space<vmem>>, vector<1x128xf32>
    tpu.vector_store %arg3[%c0_7, %c0_8], %23 {strides = array<i32>} : memref<2x128xf32, #tpu.memory_space<vmem>>, vector<1x128xf32>,
    %c0_9 = arith.constant 0 : index
    %c0_10 = arith.constant 0 : index
    %25 = vector.load %arg4[%c0_9, %c0_10] : memref<2x128xi32, #tpu.memory_space<vmem>>, vector<1x128xi32>
    tpu.vector_store %arg4[%c0_9, %c0_10], %20 {strides = array<i32>} : memref<2x128xi32, #tpu.memory_space<vmem>>, vector<1x128xi32>,
    %26 = vector.broadcast %20 : vector<1x128xi32> to vector<8x128xi32>
    %27 = arith.cmpi eq, %12, %26 : vector<8x128xi32>
    %cst_11 = arith.constant 0xFF800000 : f32
    %28 = vector.broadcast %cst_11 : f32 to vector<8x128xf32>
    %29 = arith.select %27, %28, %3 : vector<8x128xi1>, vector<8x128xf32>
    %cst_12 = arith.constant dense<0xFF800000> : vector<128xf32>
    %30 = vector.multi_reduction <maximumf>, %29, %cst_12 [0] : vector<8x128xf32> to vector<128xf32>
    %31 = vector.shape_cast %30 : vector<128xf32> to vector<1x128xf32>
    %32 = vector.broadcast %31 : vector<1x128xf32> to vector<8x128xf32>
    %33 = arith.cmpf oeq, %29, %32 : vector<8x128xf32>
    %c8_i32_13 = arith.constant 8 : i32
    %34 = vector.broadcast %c8_i32_13 : i32 to vector<8x128xi32>
    %35 = arith.select %33, %12, %34 : vector<8x128xi1>, vector<8x128xi32>
    %cst_14 = arith.constant dense<2147483647> : vector<128xi32>
    %36 = vector.multi_reduction <minsi>, %35, %cst_14 [0] : vector<8x128xi32> to vector<128xi32>
    %37 = vector.shape_cast %36 : vector<128xi32> to vector<1x128xi32>
    %38 = arith.subf %31, %5 : vector<1x128xf32>
    %39 = math.exp %38 : vector<1x128xf32>
    %40 = arith.mulf %39, %11 : vector<1x128xf32>
    %c1 = arith.constant 1 : index
    %c0_15 = arith.constant 0 : index
    %41 = vector.load %arg3[%c1, %c0_15] : memref<2x128xf32, #tpu.memory_space<vmem>>, vector<1x128xf32>
    tpu.vector_store %arg3[%c1, %c0_15], %40 {strides = array<i32>} : memref<2x128xf32, #tpu.memory_space<vmem>>, vector<1x128xf32>,
    %c1_16 = arith.constant 1 : index
    %c0_17 = arith.constant 0 : index
    %42 = vector.load %arg4[%c1_16, %c0_17] : memref<2x128xi32, #tpu.memory_space<vmem>>, vector<1x128xi32>
    tpu.vector_store %arg4[%c1_16, %c0_17], %37 {strides = array<i32>} : memref<2x128xi32, #tpu.memory_space<vmem>>, vector<1x128xi32>,
    return
  }
  func.func @transform_0(%arg0: i32) -> (i32, i32) {
    %c0_i32 = arith.constant 0 : i32
    %c0_i32_0 = arith.constant 0 : i32
    return %arg0, %c0_i32 : i32, i32
  }
  func.func @transform_1(%arg0: i32) -> (i32, i32) {
    %c0_i32 = arith.constant 0 : i32
    %c0_i32_0 = arith.constant 0 : i32
    %c0_i32_1 = arith.constant 0 : i32
    return %c0_i32, %c0_i32_0 : i32, i32
  }
  func.func @transform_2(%arg0: i32) -> (i32, i32) {
    %c0_i32 = arith.constant 0 : i32
    %c0_i32_0 = arith.constant 0 : i32
    return %c0_i32, %arg0 : i32, i32
  }
  func.func @transform_3(%arg0: i32) -> (i32, i32) {
    %c0_i32 = arith.constant 0 : i32
    %c0_i32_0 = arith.constant 0 : i32
    return %c0_i32, %arg0 : i32, i32
  }
}

</mosaic_0001>

<bundles_post_ra>
// kernel: tpu_custom_call.1
= control target key start
LH: loop header
LB: loop body
LE: loop exit
PB: predicated region body
PF: predicated region fallthrough
CT: control target
= control target key end

     0   :  { %9 = vsyncpa [#allocation3], 0  ;;  %vm48_vm0 = vcmask 261120   ;;  %v422_v1 = vmov 0.0   ;;  %vm423_vm1 = vmmov 0   ;;  %s496_s0 = inlined_call_operand.vmem [shape: bf16[128,32], index: 0, kind: input, shape index: {}]   ;;  %s497_s1 = inlined_call_operand.vmem [shape: f32[8,32], index: 1, kind: input, shape index: {}]   ;;  %s498_s2 = inlined_call_operand.hbm [shape: f32[2,128], index: 2, kind: output, shape index: {0}]   ;;  %s499_s3 = inlined_call_operand.hbm [shape: s32[2,128], index: 3, kind: output, shape index: {1}]  }
   0x1   :  { %v313_v0 = vld [vmem:[%s496_s0 + $0x38] sm:$0xff]   ;;  %331 = vmatprep.subr.mxu0 %v422_v1  ;;  %363 = vmatprep.mubr.msk.f32.mxu0 %vm423_vm1, %v422_v1 }
   0x2   :  { %v306_v2 = vunpack.c.h.bf16 %v313_v0  ;;  %v305_v3 = vunpack.c.l.bf16 %v313_v0 }
   0x4   :  { %332 = vmatpush3.xpose.msk.msra.mxu0 %vm48_vm0, %v306_v2 }
   0x5   :  { %10 = vsyncpa [#allocation5], 0  ;;  %333 = vmatprep.subr.mxu0 %v422_v1  ;;  %v312_v4 = vld [vmem:[%s496_s0 + $0x30] sm:$0xff]   ;;  %v311_v7 = vld [vmem:[%s496_s0 + $0x28] sm:$0xff]   ;;  %v186_v31 = vlaneseq  ;;  %s425_s30 = smov [#allocation2]  }
   0x6   :  { %v302_v5 = vunpack.c.h.bf16 %v312_v4  ;;  %v301_v6 = vunpack.c.l.bf16 %v312_v4  ;;  %v298_v8 = vunpack.c.h.bf16 %v311_v7  ;;  %v297_v9 = vunpack.c.l.bf16 %v311_v7  ;;  %v310_v10 = vld [vmem:[%s496_s0 + $0x20] sm:$0xff]   ;;  %v309_v13 = vld [vmem:[%s496_s0 + $0x18] sm:$0xff]   ;;  %v308_v16 = vld [vmem:[%s496_s0 + $0x10] sm:$0xff]   ;;  %s236_s4 = sshll.u32 %s425_s30, 4  ;;  %s237_s4 = int_to_ptr.vmem [resolvable:$true] %s236_s4 }
   0x7   :  { %v294_v11 = vunpack.c.h.bf16 %v310_v10  ;;  %v293_v12 = vunpack.c.l.bf16 %v310_v10  ;;  %v290_v14 = vunpack.c.h.bf16 %v309_v13  ;;  %v289_v15 = vunpack.c.l.bf16 %v309_v13  ;;  %v307_v19 = vld [vmem:[%s496_s0 + $0x8] sm:$0xff]   ;;  %v276_v22 = vld [vmem:[%s496_s0] sm:$0xff]   ;;  %s424_s0 = smov [#allocation4]  }
   0x8   :  { %334 = vmatpush3.xpose.msk.msra.mxu0 %vm48_vm0, %v305_v3  ;;  %v286_v17 = vunpack.c.h.bf16 %v308_v16  ;;  %v285_v18 = vunpack.c.l.bf16 %v308_v16  ;;  %v282_v20 = vunpack.c.h.bf16 %v307_v19  ;;  %v281_v21 = vunpack.c.l.bf16 %v307_v19  ;;  %v31_v25 = vld [vmem:[%s497_s1] sm:$0xff]  ;;  %s246_s1 = sshll.u32 %s424_s0, 4  ;;  %s247_s1 = int_to_ptr.vmem [resolvable:$true] %s246_s1 }
   0x9   :  { %335 = vmatprep.subr.mxu0 %v422_v1  ;;  %v278_v23 = vunpack.c.h.bf16 %v276_v22  ;;  %v277_v24 = vunpack.c.l.bf16 %v276_v22  ;;  %v187_v34 = vshrl.u32 %v186_v31, 7  ;;  %s378_s5 = scalar_lea.vmem %s247_s1, 32  ;;  %p383_p1 = scmp.lt.s32.totalorder %s247_s1, %s247_s1 }
   0xa   :  { %p379_p0 = scmp.ne.s32.totalorder %s247_s1, %s378_s5  ;;  %p384_p2 = scmp.lt.s32.totalorder %s378_s5, %s378_s5 }
   0xc   :  { %336 = vmatpush3.xpose.msk.msra.mxu0 %vm48_vm0, %v302_v5  ;;  %p385_p3 = por %p384_p2, %p383_p1 }
   0xd   :  { %337 = vmatprep.subr.mxu0 %v422_v1 }
   0xe   :  { %p386_p4 = pnand %p385_p3, %p379_p0 }
  0x10   :  { %338 = vmatpush3.xpose.msk.msra.mxu0 %vm48_vm0, %v301_v6 }
  0x11   :  { %339 = vmatprep.subr.mxu0 %v422_v1 }
  0x14   :  { %340 = vmatpush3.xpose.msk.msra.mxu0 %vm48_vm0, %v298_v8 }
  0x15   :  { %341 = vmatprep.subr.mxu0 %v422_v1 }
  0x18   :  { %342 = vmatpush3.xpose.msk.msra.mxu0 %vm48_vm0, %v297_v9 }
  0x19   :  { %343 = vmatprep.subr.mxu0 %v422_v1 }
  0x1c   :  { %344 = vmatpush3.xpose.msk.msra.mxu0 %vm48_vm0, %v294_v11 }
  0x1d   :  { %345 = vmatprep.subr.mxu0 %v422_v1 }
  0x20   :  { %346 = vmatpush3.xpose.msk.msra.mxu0 %vm48_vm0, %v293_v12 }
  0x21   :  { %347 = vmatprep.subr.mxu0 %v422_v1 }
  0x24   :  { %348 = vmatpush3.xpose.msk.msra.mxu0 %vm48_vm0, %v290_v14 }
  0x25   :  { %349 = vmatprep.subr.mxu0 %v422_v1 }
  0x28   :  { %350 = vmatpush3.xpose.msk.msra.mxu0 %vm48_vm0, %v289_v15 }
  0x29   :  { %351 = vmatprep.subr.mxu0 %v422_v1 }
  0x2c   :  { %352 = vmatpush3.xpose.msk.msra.mxu0 %vm48_vm0, %v286_v17 }
  0x2d   :  { %353 = vmatprep.subr.mxu0 %v422_v1 }
  0x30   :  { %354 = vmatpush3.xpose.msk.msra.mxu0 %vm48_vm0, %v285_v18 }
  0x31   :  { %355 = vmatprep.subr.mxu0 %v422_v1 }
  0x34   :  { %356 = vmatpush3.xpose.msk.msra.mxu0 %vm48_vm0, %v282_v20 }
  0x35   :  { %357 = vmatprep.subr.mxu0 %v422_v1 }
  0x38   :  { %358 = vmatpush3.xpose.msk.msra.mxu0 %vm48_vm0, %v281_v21 }
  0x39   :  { %359 = vmatprep.subr.mxu0 %v422_v1 }
  0x3c   :  { %360 = vmatpush3.xpose.msk.msra.mxu0 %vm48_vm0, %v278_v23 }
  0x3d   :  { %361 = vmatprep.subr.mxu0 %v422_v1 }
  0x40   :  { %362 = vmatpush3.xpose.msk.msra.mxu0 %vm48_vm0, %v277_v24 }
  0x43   :  { %364 = vmatmul.mubr.msk.f32.vlgmr.msra.gmra.mxu0 %vm48_vm0, %v31_v25 }
 0x103   :  { %v166_v26 = vpop.f32.mrf.mxu0 }
 0x104   :  { %v170_v27 = vrot.slane %v166_v26, 4 }
 0x105   :  { %v365_v28 = vpop.f32.mrf.mxu0 }
 0x106   :  { %v171_v29 = vmax.f32 %v166_v26, %v170_v27 }
 0x108   :  { %v172_v30 = vrot.slane %v171_v29, 2 }
 0x10a   :  { %v173_v32 = vmax.f32 %v171_v29, %v172_v30 }
 0x10c   :  { %v174_v33 = vrot.slane %v173_v32, 1 }
 0x10e   :  { %v175_v35 = vmax.f32 %v173_v32, %v174_v33 }
 0x110   :  { %v176_v36 = vsub.f32 %v166_v26, %v175_v35  ;;  %vm188_vm2 = vcmp.eq.f32.partialorder %v166_v26, %v175_v35  ;;  %v199_v52 = vsub.f32 %v175_v35, %v175_v35 }
 0x111   :  { %v189_v37 = vsel %vm188_vm2, %v187_v34, 8 }
 0x112   :  { %v177_v38 = vmul.f32 1.442695, %v176_v36  ;;  %v190_v39 = vrot.slane %v189_v37, 4  ;;  %v200_v57 = vmul.f32 1.442695, %v199_v52 }
 0x114   :  { %370 = vpow2.f32 %v177_v38  ;;  %vm191_vm3 = vcmp.lt.s32.totalorder %v189_v37, %v190_v39 }
 0x115   :  { %v192_v40 = vsel %vm191_vm3, %v189_v37, %v190_v39  ;;  %372 = vpow2.f32 %v200_v57 }
 0x116   :  { %v193_v41 = vrot.slane %v192_v40, 2 }
 0x118   :  { %vm194_vm4 = vcmp.lt.s32.totalorder %v192_v40, %v193_v41 }
 0x119   :  { %v195_v42 = vsel %vm194_vm4, %v192_v40, %v193_v41 }
 0x11a   :  { %v196_v43 = vrot.slane %v195_v42, 1 }
 0x11c   :  { %vm197_vm5 = vcmp.lt.s32.totalorder %v195_v42, %v196_v43 }
 0x11d   :  { %v198_v44 = vsel %vm197_vm5, %v195_v42, %v196_v43 }
 0x11e   :  { %vm205_vm6 = vcmp.eq.s32.totalorder %v187_v34, %v198_v44  ;;  %204 = vst [vmem:[#allocation4] sm:$0x1] %v198_v44 }
 0x11f   :  { %v206_v45 = vsel %vm205_vm6, -inf, %v166_v26 }
 0x120   :  { %v207_v46 = vrot.slane %v206_v45, 4 }
 0x121   :  { %v371_v47 = vpop.eup %370 }
 0x122   :  { %v208_v48 = vmax.f32 %v206_v45, %v207_v46  ;;  %v179_v49 = vrot.slane %v371_v47, 4  ;;  %v373_v6 = vpop.eup %372 }
 0x124   :  { %v209_v50 = vrot.slane %v208_v48, 2  ;;  %v180_v51 = vadd.f32 %v371_v47, %v179_v49 }
 0x126   :  { %v210_v53 = vmax.f32 %v208_v48, %v209_v50  ;;  %v181_v54 = vrot.slane %v180_v51, 2 }
 0x128   :  { %v211_v55 = vrot.slane %v210_v53, 1  ;;  %v182_v56 = vadd.f32 %v181_v54, %v180_v51 }
 0x12a   :  { %v212_v58 = vmax.f32 %v210_v53, %v211_v55  ;;  %v183_v59 = vrot.slane %v182_v56, 1 }
 0x12c   :  { %vm213_vm7 = vcmp.eq.f32.partialorder %v206_v45, %v212_v58  ;;  %v224_v60 = vsub.f32 %v212_v58, %v175_v35  ;;  %v184_v61 = vadd.f32 %v183_v59, %v182_v56 }
 0x12d   :  { %v214_v62 = vsel %vm213_vm7, %v187_v34, 8 }
 0x12e   :  { %v225_v63 = vmul.f32 1.442695, %v224_v60  ;;  %374 = vrcp.f32 %v184_v61  ;;  %v215_v0 = vrot.slane %v214_v62, 4 }
 0x130   :  { %376 = vpow2.f32 %v225_v63  ;;  %vm216_vm8 = vcmp.lt.s32.totalorder %v214_v62, %v215_v0 }
 0x131   :  { %v217_v1 = vsel %vm216_vm8, %v214_v62, %v215_v0 }
 0x132   :  { %v218_v2 = vrot.slane %v217_v1, 2 }
 0x134   :  { %vm219_vm9 = vcmp.lt.s32.totalorder %v217_v1, %v218_v2 }
 0x135   :  { %v220_v3 = vsel %vm219_vm9, %v217_v1, %v218_v2 }
 0x136   :  { %v221_v4 = vrot.slane %v220_v3, 1 }
 0x138   :  { %vm222_vm10 = vcmp.lt.s32.totalorder %v220_v3, %v221_v4 }
 0x139   :  { %v223_v5 = vsel %vm222_vm10, %v220_v3, %v221_v4 }
 0x13a   :  { %229 = vst [vmem:[#allocation4 + $0x1] sm:$0x1] %v223_v5 }
 0x13b   :  { %v375_v7 = vpop.eup %374 }
 0x13c   :  { %389 = shalt.err (!%p386_p4)
}
 0x13d   :  { %249 = dma.vmem_to_hbm [thread:$0]  %s247_s1, 32, %s499_s3, [#allocation5]   ;;  %v202_v8 = vmul.f32 %v375_v7, %v373_v6  ;;  %v377_v9 = vpop.eup %376 }
 0x13e   :  { %v227_v10 = vmul.f32 %v377_v9, %v375_v7  ;;  %s398_s8 = scalar_lea.vmem %s237_s4, 32  ;;  %p403_p6 = scmp.lt.s32.totalorder %s237_s4, %s237_s4 }
 0x13f   :  { %203 = vst [vmem:[#allocation2] sm:$0x1] %v202_v8  ;;  %p399_p5 = scmp.ne.s32.totalorder %s237_s4, %s398_s8  ;;  %p404_p7 = scmp.lt.s32.totalorder %s398_s8, %s398_s8 }
 0x140   :  { %228 = vst [vmem:[#allocation2 + $0x1] sm:$0x1] %v227_v10 }
 0x141   :  { %p405_p8 = por %p404_p7, %p403_p6 }
 0x143   :  { %p406_p9 = pnand %p405_p8, %p399_p5 }
 0x145   :  { %409 = shalt.err (!%p406_p9)
}
 0x146   :  { %239 = dma.vmem_to_hbm [thread:$0]  %s237_s4, 32, %s498_s2, [#allocation3]  }
 0x147   :  { %418 = dma.done.wait [#allocation3], 32  }
 0x148   :  { %419 = vsyncadd [#allocation3], 4294967264 }
 0x149   :  { %420 = dma.done.wait [#allocation5], 32  }
 0x14a   :  { %421 = vsyncadd [#allocation5], 4294967264 }
 0x14b   :  { %256 = vsyncpa [#allocation3], 1 }
 0x14c   :  { %257 = vsyncpa [#allocation5], 1 }

// kernel: tpu_custom_call.1
= control target key start
LH: loop header
LB: loop body
LE: loop exit
PB: predicated region body
PF: predicated region fallthrough
CT: control target
= control target key end

     0   :  { %9 = vsyncpa [#allocation3], 0  ;;  %vm48_vm0 = vcmask 261120   ;;  %v422_v1 = vmov 0.0   ;;  %vm423_vm1 = vmmov 0   ;;  %s496_s0 = inlined_call_operand.vmem [shape: bf16[128,32], index: 0, kind: input, shape index: {}]   ;;  %s497_s1 = inlined_call_operand.vmem [shape: f32[8,32], index: 1, kind: input, shape index: {}]   ;;  %s498_s2 = inlined_call_operand.hbm [shape: f32[2,128], index: 2, kind: output, shape index: {0}]   ;;  %s499_s3 = inlined_call_operand.hbm [shape: s32[2,128], index: 3, kind: output, shape index: {1}]  }
   0x1   :  { %v313_v0 = vld [vmem:[%s496_s0 + $0x38] sm:$0xff]   ;;  %331 = vmatprep.subr.mxu0 %v422_v1  ;;  %363 = vmatprep.mubr.msk.f32.mxu0 %vm423_vm1, %v422_v1 }
   0x2   :  { %v306_v2 = vunpack.c.h.bf16 %v313_v0  ;;  %v305_v3 = vunpack.c.l.bf16 %v313_v0 }
   0x4   :  { %332 = vmatpush3.xpose.msk.msra.mxu0 %vm48_vm0, %v306_v2 }
   0x5   :  { %10 = vsyncpa [#allocation5], 0  ;;  %333 = vmatprep.subr.mxu0 %v422_v1  ;;  %v312_v4 = vld [vmem:[%s496_s0 + $0x30] sm:$0xff]   ;;  %v311_v7 = vld [vmem:[%s496_s0 + $0x28] sm:$0xff]   ;;  %v186_v31 = vlaneseq  ;;  %s425_s30 = smov [#allocation2]  }
   0x6   :  { %v302_v5 = vunpack.c.h.bf16 %v312_v4  ;;  %v301_v6 = vunpack.c.l.bf16 %v312_v4  ;;  %v298_v8 = vunpack.c.h.bf16 %v311_v7  ;;  %v297_v9 = vunpack.c.l.bf16 %v311_v7  ;;  %v310_v10 = vld [vmem:[%s496_s0 + $0x20] sm:$0xff]   ;;  %v309_v13 = vld [vmem:[%s496_s0 + $0x18] sm:$0xff]   ;;  %v308_v16 = vld [vmem:[%s496_s0 + $0x10] sm:$0xff]   ;;  %s236_s4 = sshll.u32 %s425_s30, 4  ;;  %s237_s4 = int_to_ptr.vmem [resolvable:$true] %s236_s4 }
   0x7   :  { %v294_v11 = vunpack.c.h.bf16 %v310_v10  ;;  %v293_v12 = vunpack.c.l.bf16 %v310_v10  ;;  %v290_v14 = vunpack.c.h.bf16 %v309_v13  ;;  %v289_v15 = vunpack.c.l.bf16 %v309_v13  ;;  %v307_v19 = vld [vmem:[%s496_s0 + $0x8] sm:$0xff]   ;;  %v276_v22 = vld [vmem:[%s496_s0] sm:$0xff]   ;;  %s424_s0 = smov [#allocation4]  }
   0x8   :  { %334 = vmatpush3.xpose.msk.msra.mxu0 %vm48_vm0, %v305_v3  ;;  %v286_v17 = vunpack.c.h.bf16 %v308_v16  ;;  %v285_v18 = vunpack.c.l.bf16 %v308_v16  ;;  %v282_v20 = vunpack.c.h.bf16 %v307_v19  ;;  %v281_v21 = vunpack.c.l.bf16 %v307_v19  ;;  %v31_v25 = vld [vmem:[%s497_s1] sm:$0xff]  ;;  %s246_s1 = sshll.u32 %s424_s0, 4  ;;  %s247_s1 = int_to_ptr.vmem [resolvable:$true] %s246_s1 }
   0x9   :  { %335 = vmatprep.subr.mxu0 %v422_v1  ;;  %v278_v23 = vunpack.c.h.bf16 %v276_v22  ;;  %v277_v24 = vunpack.c.l.bf16 %v276_v22  ;;  %v187_v34 = vshrl.u32 %v186_v31, 7  ;;  %s378_s5 = scalar_lea.vmem %s247_s1, 32  ;;  %p383_p1 = scmp.lt.s32.totalorder %s247_s1, %s247_s1 }
   0xa   :  { %p379_p0 = scmp.ne.s32.totalorder %s247_s1, %s378_s5  ;;  %p384_p2 = scmp.lt.s32.totalorder %s378_s5, %s378_s5 }
   0xc   :  { %336 = vmatpush3.xpose.msk.msra.mxu0 %vm48_vm0, %v302_v5  ;;  %p385_p3 = por %p384_p2, %p383_p1 }
   0xd   :  { %337 = vmatprep.subr.mxu0 %v422_v1 }
   0xe   :  { %p386_p4 = pnand %p385_p3, %p379_p0 }
  0x10   :  { %338 = vmatpush3.xpose.msk.msra.mxu0 %vm48_vm0, %v301_v6 }
  0x11   :  { %339 = vmatprep.subr.mxu0 %v422_v1 }
  0x14   :  { %340 = vmatpush3.xpose.msk.msra.mxu0 %vm48_vm0, %v298_v8 }
  0x15   :  { %341 = vmatprep.subr.mxu0 %v422_v1 }
  0x18   :  { %342 = vmatpush3.xpose.msk.msra.mxu0 %vm48_vm0, %v297_v9 }
  0x19   :  { %343 = vmatprep.subr.mxu0 %v422_v1 }
  0x1c   :  { %344 = vmatpush3.xpose.msk.msra.mxu0 %vm48_vm0, %v294_v11 }
  0x1d   :  { %345 = vmatprep.subr.mxu0 %v422_v1 }
  0x20   :  { %346 = vmatpush3.xpose.msk.msra.mxu0 %vm48_vm0, %v293_v12 }
  0x21   :  { %347 = vmatprep.subr.mxu0 %v422_v1 }
  0x24   :  { %348 = vmatpush3.xpose.msk.msra.mxu0 %vm48_vm0, %v290_v14 }
  0x25   :  { %349 = vmatprep.subr.mxu0 %v422_v1 }
  0x28   :  { %350 = vmatpush3.xpose.msk.msra.mxu0 %vm48_vm0, %v289_v15 }
  0x29   :  { %351 = vmatprep.subr.mxu0 %v422_v1 }
  0x2c   :  { %352 = vmatpush3.xpose.msk.msra.mxu0 %vm48_vm0, %v286_v17 }
  0x2d   :  { %353 = vmatprep.subr.mxu0 %v422_v1 }
  0x30   :  { %354 = vmatpush3.xpose.msk.msra.mxu0 %vm48_vm0, %v285_v18 }
  0x31   :  { %355 = vmatprep.subr.mxu0 %v422_v1 }
  0x34   :  { %356 = vmatpush3.xpose.msk.msra.mxu0 %vm48_vm0, %v282_v20 }
  0x35   :  { %357 = vmatprep.subr.mxu0 %v422_v1 }
  0x38   :  { %358 = vmatpush3.xpose.msk.msra.mxu0 %vm48_vm0, %v281_v21 }
  0x39   :  { %359 = vmatprep.subr.mxu0 %v422_v1 }
  0x3c   :  { %360 = vmatpush3.xpose.msk.msra.mxu0 %vm48_vm0, %v278_v23 }
  0x3d   :  { %361 = vmatprep.subr.mxu0 %v422_v1 }
  0x40   :  { %362 = vmatpush3.xpose.msk.msra.mxu0 %vm48_vm0, %v277_v24 }
  0x43   :  { %364 = vmatmul.mubr.msk.f32.vlgmr.msra.gmra.mxu0 %vm48_vm0, %v31_v25 }
 0x103   :  { %v166_v26 = vpop.f32.mrf.mxu0 }
 0x104   :  { %v170_v27 = vrot.slane %v166_v26, 4 }
 0x105   :  { %v365_v28 = vpop.f32.mrf.mxu0 }
 0x106   :  { %v171_v29 = vmax.f32 %v166_v26, %v170_v27 }
 0x108   :  { %v172_v30 = vrot.slane %v171_v29, 2 }
 0x10a   :  { %v173_v32 = vmax.f32 %v171_v29, %v172_v30 }
 0x10c   :  { %v174_v33 = vrot.slane %v173_v32, 1 }
 0x10e   :  { %v175_v35 = vmax.f32 %v173_v32, %v174_v33 }
 0x110   :  { %v176_v36 = vsub.f32 %v166_v26, %v175_v35  ;;  %vm188_vm2 = vcmp.eq.f32.partialorder %v166_v26, %v175_v35  ;;  %v199_v52 = vsub.f32 %v175_v35, %v175_v35 }
 0x111   :  { %v189_v37 = vsel %vm188_vm2, %v187_v34, 8 }
 0x112   :  { %v177_v38 = vmul.f32 1.442695, %v176_v36  ;;  %v190_v39 = vrot.slane %v189_v37, 4  ;;  %v200_v57 = vmul.f32 1.442695, %v199_v52 }
 0x114   :  { %370 = vpow2.f32 %v177_v38  ;;  %vm191_vm3 = vcmp.lt.s32.totalorder %v189_v37, %v190_v39 }
 0x115   :  { %v192_v40 = vsel %vm191_vm3, %v189_v37, %v190_v39  ;;  %372 = vpow2.f32 %v200_v57 }
 0x116   :  { %v193_v41 = vrot.slane %v192_v40, 2 }
 0x118   :  { %vm194_vm4 = vcmp.lt.s32.totalorder %v192_v40, %v193_v41 }
 0x119   :  { %v195_v42 = vsel %vm194_vm4, %v192_v40, %v193_v41 }
 0x11a   :  { %v196_v43 = vrot.slane %v195_v42, 1 }
 0x11c   :  { %vm197_vm5 = vcmp.lt.s32.totalorder %v195_v42, %v196_v43 }
 0x11d   :  { %v198_v44 = vsel %vm197_vm5, %v195_v42, %v196_v43 }
 0x11e   :  { %vm205_vm6 = vcmp.eq.s32.totalorder %v187_v34, %v198_v44  ;;  %204 = vst [vmem:[#allocation4] sm:$0x1] %v198_v44 }
 0x11f   :  { %v206_v45 = vsel %vm205_vm6, -inf, %v166_v26 }
 0x120   :  { %v207_v46 = vrot.slane %v206_v45, 4 }
 0x121   :  { %v371_v47 = vpop.eup %370 }
 0x122   :  { %v208_v48 = vmax.f32 %v206_v45, %v207_v46  ;;  %v179_v49 = vrot.slane %v371_v47, 4  ;;  %v373_v6 = vpop.eup %372 }
 0x124   :  { %v209_v50 = vrot.slane %v208_v48, 2  ;;  %v180_v51 = vadd.f32 %v371_v47, %v179_v49 }
 0x126   :  { %v210_v53 = vmax.f32 %v208_v48, %v209_v50  ;;  %v181_v54 = vrot.slane %v180_v51, 2 }
 0x128   :  { %v211_v55 = vrot.slane %v210_v53, 1  ;;  %v182_v56 = vadd.f32 %v181_v54, %v180_v51 }
 0x12a   :  { %v212_v58 = vmax.f32 %v210_v53, %v211_v55  ;;  %v183_v59 = vrot.slane %v182_v56, 1 }
 0x12c   :  { %vm213_vm7 = vcmp.eq.f32.partialorder %v206_v45, %v212_v58  ;;  %v224_v60 = vsub.f32 %v212_v58, %v175_v35  ;;  %v184_v61 = vadd.f32 %v183_v59, %v182_v56 }
 0x12d   :  { %v214_v62 = vsel %vm213_vm7, %v187_v34, 8 }
 0x12e   :  { %v225_v63 = vmul.f32 1.442695, %v224_v60  ;;  %374 = vrcp.f32 %v184_v61  ;;  %v215_v0 = vrot.slane %v214_v62, 4 }
 0x130   :  { %376 = vpow2.f32 %v225_v63  ;;  %vm216_vm8 = vcmp.lt.s32.totalorder %v214_v62, %v215_v0 }
 0x131   :  { %v217_v1 = vsel %vm216_vm8, %v214_v62, %v215_v0 }
 0x132   :  { %v218_v2 = vrot.slane %v217_v1, 2 }
 0x134   :  { %vm219_vm9 = vcmp.lt.s32.totalorder %v217_v1, %v218_v2 }
 0x135   :  { %v220_v3 = vsel %vm219_vm9, %v217_v1, %v218_v2 }
 0x136   :  { %v221_v4 = vrot.slane %v220_v3, 1 }
 0x138   :  { %vm222_vm10 = vcmp.lt.s32.totalorder %v220_v3, %v221_v4 }
 0x139   :  { %v223_v5 = vsel %vm222_vm10, %v220_v3, %v221_v4 }
 0x13a   :  { %229 = vst [vmem:[#allocation4 + $0x1] sm:$0x1] %v223_v5 }
 0x13b   :  { %v375_v7 = vpop.eup %374 }
 0x13c   :  { %389 = shalt.err (!%p386_p4)
}
 0x13d   :  { %249 = dma.vmem_to_hbm [thread:$0]  %s247_s1, 32, %s499_s3, [#allocation5]   ;;  %v202_v8 = vmul.f32 %v375_v7, %v373_v6  ;;  %v377_v9 = vpop.eup %376 }
 0x13e   :  { %v227_v10 = vmul.f32 %v377_v9, %v375_v7  ;;  %s398_s8 = scalar_lea.vmem %s237_s4, 32  ;;  %p403_p6 = scmp.lt.s32.totalorder %s237_s4, %s237_s4 }
 0x13f   :  { %203 = vst [vmem:[#allocation2] sm:$0x1] %v202_v8  ;;  %p399_p5 = scmp.ne.s32.totalorder %s237_s4, %s398_s8  ;;  %p404_p7 = scmp.lt.s32.totalorder %s398_s8, %s398_s8 }
 0x140   :  { %228 = vst [vmem:[#allocation2 + $0x1] sm:$0x1] %v227_v10 }
 0x141   :  { %p405_p8 = por %p404_p7, %p403_p6 }
 0x143   :  { %p406_p9 = pnand %p405_p8, %p399_p5 }
 0x145   :  { %409 = shalt.err (!%p406_p9)
}
 0x146   :  { %239 = dma.vmem_to_hbm [thread:$0]  %s237_s4, 32, %s498_s2, [#allocation3]  }
 0x147   :  { %418 = dma.done.wait [#allocation3], 32  }
 0x148   :  { %419 = vsyncadd [#allocation3], 4294967264 }
 0x149   :  { %420 = dma.done.wait [#allocation5], 32  }
 0x14a   :  { %421 = vsyncadd [#allocation5], 4294967264 }
 0x14b   :  { %256 = vsyncpa [#allocation3], 1 }
 0x14c   :  { %257 = vsyncpa [#allocation5], 1 }

</bundles_post_ra>
